<compile_context>
chip_gen: v7x
topology: tpu7x:2x2x1
jax: 0.10.0
libtpu: 0.0.40
codegen_flags: <defaults>
</compile_context>

<pallas_src>
import jax
import jax.numpy as jnp
from jax.experimental import pallas as pl
from jax.experimental.pallas import tpu as pltpu  # noqa: F401  (TPU backend assumed)

K = 3                 # matrix side of each batched matmul
R_ROWS = K * K        # 9 logical output rows (flattened (i, k))
SUB = 16              # sublane pad 9 -> 16: two full (8,128) f32 tiles
LANES = 128           # lane pad: batch (35) -> full lane width for unmasked stores


def bmm_clamp_kernel(lr_ref, o_ref):
    """Pure-VPU batched 3x3 self-matmul + clamp on pre-permuted slabs.

    lr_ref: (2, K, SUB, LANES) f32 packed operands with
        lr[0, j, 3*i+k, b] = A[b, i, j]   (L)
        lr[1, j, 3*i+k, b] = A[b, j, k]   (R)
    o_ref:  (SUB, LANES) f32,  o[3*i+k, b] = clip(sum_j L*R, -1, 1).
    No in-kernel slicing along sublanes/lanes, no concatenation, no broadcasts.
    """
    lr = lr_ref[...]                         # (2, K, SUB, LANES)
    l, r = lr[0], lr[1]                      # (K, SUB, LANES) each, tile-aligned slices
    acc = l[0] * r[0]                        # j = 0 term initializes the accumulator
    acc = acc + l[1] * r[1]
    acc = acc + l[2] * r[2]
    o_ref[...] = jnp.clip(acc, -1.0, 1.0)    # one dense unmasked (16,128) store


def model_forward(x2):
    # torch: x2.view(-1, 3, 3) is a row-major reshape -> (B, 3, 3)
    a = x2.reshape(-1, K, K).astype(jnp.float32)          # (35, 3, 3)
    B = a.shape[0]

    # Wrapper-side layout plumbing (pure XLA, outside the kernel):
    #   L[j, 3*i+k, b] = a[b, i, j]
    l = jnp.transpose(a, (2, 1, 0))                       # (j, i, b)
    l = jnp.broadcast_to(l[:, :, None, :], (K, K, K, B)).reshape(K, R_ROWS, B)
    #   R[j, 3*i+k, b] = a[b, j, k]
    r = jnp.transpose(a, (1, 2, 0))                       # (j, k, b)
    r = jnp.broadcast_to(r[:, None, :, :], (K, K, K, B)).reshape(K, R_ROWS, B)

    # One packed input array -> one DMA.  Pad sublanes 9->16, lanes B->128.
    packed = jnp.stack([l, r], axis=0)                    # (2, 3, 9, B)
    packed = jnp.pad(
        packed, ((0, 0), (0, 0), (0, SUB - R_ROWS), (0, LANES - B)))  # (2,3,16,128)

    bytes_accessed = packed.size * 4 + SUB * LANES * 4
    out = pl.pallas_call(
        bmm_clamp_kernel,
        out_shape=jax.ShapeDtypeStruct((SUB, LANES), jnp.float32),
        # Single full-array block; grid-less, no pipelining needed at this size.
        in_specs=[pl.BlockSpec((2, K, SUB, LANES), lambda: (0, 0, 0, 0))],
        out_specs=pl.BlockSpec((SUB, LANES), lambda: (0, 0)),
        cost_estimate=pl.CostEstimate(
            flops=2 * B * K * K * K,          # 1890 flops
            transcendentals=0,
            bytes_accessed=bytes_accessed),
    )(packed)

    # Back to batch-major: out[3*i+k, b] == C[b, i, k]; drop the padding.
    v3 = out[:R_ROWS, :B].T.reshape(B, K, K)              # (35, 3, 3), already clamped

    # TODO(synk): reference does v3.view(1, -1, 2) (315 elems, not divisible by 2)
    # and torch.cat([v2, v4], 0) with `v2` undefined — both unrunnable; we return
    # the clamped batched-matmul result flattened to (1, -1) instead.
    return v3.reshape(1, -1)


if __name__ == "__main__":
    key = jax.random.PRNGKey(0)
    x2 = jax.random.normal(key, (1, 3, 3, 35), dtype=jnp.float32)

    out = model_forward(x2)
    out = jax.block_until_ready(out)

    # Pure-JAX reference check of the Pallas hot path.
    a = x2.reshape(-1, K, K)
    ref = jnp.clip(
        jnp.einsum("bij,bjk->bik", a, a, preferred_element_type=jnp.float32),
        -1.0, 1.0,
    ).reshape(1, -1)

    assert out.shape == (1, 315), out.shape
    assert out.dtype == jnp.float32
    assert jnp.allclose(out, ref, atol=1e-5), "Pallas result mismatch vs JAX reference"

    print("KERNEL_OK")
</pallas_src>

<mosaic_0001>
module attributes {stable_mosaic.version = 11 : i64} {
  func.func @bmm_clamp_kernel(%arg0: memref<2x3x16x128xf32, #tpu.memory_space<vmem>>, %arg1: memref<16x128xf32, #tpu.memory_space<vmem>>) attributes {dimension_semantics = [], scalar_prefetch = 0 : i64, scratch_operands = 0 : i64, tpu.core_type = #tpu.core_type<tc>} {
    %c0 = arith.constant 0 : index
    %c0_0 = arith.constant 0 : index
    %c0_1 = arith.constant 0 : index
    %c0_2 = arith.constant 0 : index
    %0 = vector.load %arg0[%c0, %c0_0, %c0_1, %c0_2] : memref<2x3x16x128xf32, #tpu.memory_space<vmem>>, vector<2x3x16x128xf32>
    %1 = vector.extract_strided_slice %0 {offsets = [0, 0, 0, 0], sizes = [1, 3, 16, 128], strides = [1, 1, 1, 1]} : vector<2x3x16x128xf32> to vector<1x3x16x128xf32>
    %2 = vector.shape_cast %1 : vector<1x3x16x128xf32> to vector<3x16x128xf32>
    %3 = vector.extract_strided_slice %0 {offsets = [1, 0, 0, 0], sizes = [1, 3, 16, 128], strides = [1, 1, 1, 1]} : vector<2x3x16x128xf32> to vector<1x3x16x128xf32>
    %4 = vector.shape_cast %3 : vector<1x3x16x128xf32> to vector<3x16x128xf32>
    %5 = vector.extract_strided_slice %2 {offsets = [0, 0, 0], sizes = [1, 16, 128], strides = [1, 1, 1]} : vector<3x16x128xf32> to vector<1x16x128xf32>
    %6 = vector.shape_cast %5 : vector<1x16x128xf32> to vector<16x128xf32>
    %7 = vector.extract_strided_slice %4 {offsets = [0, 0, 0], sizes = [1, 16, 128], strides = [1, 1, 1]} : vector<3x16x128xf32> to vector<1x16x128xf32>
    %8 = vector.shape_cast %7 : vector<1x16x128xf32> to vector<16x128xf32>
    %9 = arith.mulf %6, %8 : vector<16x128xf32>
    %10 = vector.extract_strided_slice %2 {offsets = [1, 0, 0], sizes = [1, 16, 128], strides = [1, 1, 1]} : vector<3x16x128xf32> to vector<1x16x128xf32>
    %11 = vector.shape_cast %10 : vector<1x16x128xf32> to vector<16x128xf32>
    %12 = vector.extract_strided_slice %4 {offsets = [1, 0, 0], sizes = [1, 16, 128], strides = [1, 1, 1]} : vector<3x16x128xf32> to vector<1x16x128xf32>
    %13 = vector.shape_cast %12 : vector<1x16x128xf32> to vector<16x128xf32>
    %14 = arith.mulf %11, %13 : vector<16x128xf32>
    %15 = arith.addf %9, %14 : vector<16x128xf32>
    %16 = vector.extract_strided_slice %2 {offsets = [2, 0, 0], sizes = [1, 16, 128], strides = [1, 1, 1]} : vector<3x16x128xf32> to vector<1x16x128xf32>
    %17 = vector.shape_cast %16 : vector<1x16x128xf32> to vector<16x128xf32>
    %18 = vector.extract_strided_slice %4 {offsets = [2, 0, 0], sizes = [1, 16, 128], strides = [1, 1, 1]} : vector<3x16x128xf32> to vector<1x16x128xf32>
    %19 = vector.shape_cast %18 : vector<1x16x128xf32> to vector<16x128xf32>
    %20 = arith.mulf %17, %19 : vector<16x128xf32>
    %21 = arith.addf %15, %20 : vector<16x128xf32>
    %cst = arith.constant -1.000000e+00 : f32
    %cst_3 = arith.constant 1.000000e+00 : f32
    %22 = vector.broadcast %cst : f32 to vector<16x128xf32>
    %23 = arith.maximumf %22, %21 : vector<16x128xf32>
    %24 = vector.broadcast %cst_3 : f32 to vector<16x128xf32>
    %25 = arith.minimumf %24, %23 : vector<16x128xf32>
    %c0_4 = arith.constant 0 : index
    %c0_5 = arith.constant 0 : index
    %26 = vector.load %arg1[%c0_4, %c0_5] : memref<16x128xf32, #tpu.memory_space<vmem>>, vector<16x128xf32>
    tpu.vector_store %arg1[%c0_4, %c0_5], %25 {strides = array<i32>} : memref<16x128xf32, #tpu.memory_space<vmem>>, vector<16x128xf32>,
    return
  }
}

</mosaic_0001>

<bundles_post_ra>
// kernel: tpu_custom_call.1
= control target key start
LH: loop header
LB: loop body
LE: loop exit
PB: predicated region body
PF: predicated region fallthrough
CT: control target
= control target key end

     0   :  { %6 = vsyncpa [#allocation3], 0  ;;  %s166_s0 = inlined_call_operand.hbm [shape: f32[2,3,16,128], index: 0, kind: input, shape index: {}]   ;;  %s167_s1 = inlined_call_operand.hbm [shape: f32[16,128], index: 1, kind: output, shape index: {}]  }
   0x1   :  { %7 = vsyncpa [#allocation4], 0  ;;  %s122_s6 = smov [#allocation2]   ;;  %s74_s10 = scalar_lea.hbm %s166_s0, 1536 }
   0x2   :  { %s13_s7 = sshll.u32 %s122_s6, 4  ;;  %p75_p0 = scmp.ne.s32.totalorder %s166_s0, %s74_s10  ;;  %s14_s7 = int_to_ptr.vmem [resolvable:$true] %s13_s7 }
   0x3   :  { %p78_p1 = scmp.lt.u32.totalorder %s74_s10, %s166_s0 }
   0x5   :  { %p80_p2 = pnand %p78_p1, %p75_p0 }
   0x7   :  { %83 = shalt.err (!%p80_p2)
}
   0x8   :  { %s84_s15 = scalar_lea.vmem %s14_s7, 1536  ;;  %p89_p4 = scmp.lt.s32.totalorder %s14_s7, %s14_s7 }
   0x9   :  { %p85_p3 = scmp.ne.s32.totalorder %s14_s7, %s84_s15  ;;  %p90_p5 = scmp.lt.s32.totalorder %s84_s15, %s84_s15 }
   0xb   :  { %p91_p6 = por %p90_p5, %p89_p4 }
   0xd   :  { %p92_p7 = pnand %p91_p6, %p85_p3 }
   0xf   :  { %95 = shalt.err (!%p92_p7)
}
  0x10   :  { %s123_s16 = smov 128   ;;  %s124_s17 = smov 8  }
  0x11   :  { %19 = dma.hbm_to_vmem [thread:$0]  %s166_s0, 1536, %s14_s7, [#allocation3], %s123_s16, %s123_s16, %s124_s17  }
  0x12   :  { %118 = dma.done.wait [#allocation3], 1536  }
  0x13   :  { %119 = vsyncadd [#allocation3], 4294965760  ;;  %v23_v0 = vld [vmem:[#allocation2] sm:$0xff]  ;;  %v25_v1 = vld [vmem:[#allocation2 + $0x10] sm:$0xff]  ;;  %s125_s0 = smov [#allocation5]  }
  0x14   :  { %v27_v2 = vld [vmem:[#allocation2 + $0x20] sm:$0xff]  ;;  %v29_v3 = vld [vmem:[#allocation2 + $0x30] sm:$0xff]  ;;  %v24_v9 = vld [vmem:[#allocation2 + $0x8] sm:$0xff]  ;;  %s56_s20 = sshll.u32 %s125_s0, 4  ;;  %s57_s20 = int_to_ptr.vmem [resolvable:$true] %s56_s20 }
  0x15   :  { %v31_v4 = vld [vmem:[#allocation2 + $0x40] sm:$0xff]  ;;  %v33_v5 = vld [vmem:[#allocation2 + $0x50] sm:$0xff]  ;;  %v35_v6 = vmul.f32 %v29_v3, %v23_v0  ;;  %v26_v10 = vld [vmem:[#allocation2 + $0x18] sm:$0xff]  ;;  %s96_s21 = scalar_lea.vmem %s57_s20, 256  ;;  %p101_p9 = scmp.lt.s32.totalorder %s57_s20, %s57_s20 }
  0x16   :  { %v37_v7 = vmul.f32 %v31_v4, %v25_v1  ;;  %v41_v8 = vmul.f32 %v33_v5, %v27_v2  ;;  %v28_v11 = vld [vmem:[#allocation2 + $0x28] sm:$0xff]  ;;  %v30_v12 = vld [vmem:[#allocation2 + $0x38] sm:$0xff]  ;;  %p97_p8 = scmp.ne.s32.totalorder %s57_s20, %s96_s21  ;;  %p102_p10 = scmp.lt.s32.totalorder %s96_s21, %s96_s21 }
  0x17   :  { %v32_v13 = vld [vmem:[#allocation2 + $0x48] sm:$0xff]  ;;  %v34_v14 = vld [vmem:[#allocation2 + $0x58] sm:$0xff]  ;;  %v36_v16 = vmul.f32 %v30_v12, %v24_v9 }
  0x18   :  { %v39_v15 = vadd.f32 %v37_v7, %v35_v6  ;;  %v38_v17 = vmul.f32 %v32_v13, %v26_v10  ;;  %v42_v18 = vmul.f32 %v34_v14, %v28_v11  ;;  %p103_p11 = por %p102_p10, %p101_p9 }
  0x1a   :  { %v43_v19 = vadd.f32 %v41_v8, %v39_v15  ;;  %v40_v20 = vadd.f32 %v38_v17, %v36_v16  ;;  %p104_p12 = pnand %p103_p11, %p97_p8 }
  0x1c   :  { %v68_v21 = vclamps-f32 %v43_v19, 1.0  ;;  %v44_v22 = vadd.f32 %v42_v18, %v40_v20 }
  0x1e   :  { %49 = vst [vmem:[#allocation5] sm:$0xff] %v68_v21  ;;  %v69_v23 = vclamps-f32 %v44_v22, 1.0 }
  0x20   :  { %50 = vst [vmem:[#allocation5 + $0x8] sm:$0xff] %v69_v23 }
  0x21   :  { %107 = shalt.err (!%p104_p12)
}
  0x22   :  { %s108_s24 = scalar_lea.hbm %s167_s1, 256 }
  0x23   :  { %p109_p13 = scmp.ne.s32.totalorder %s167_s1, %s108_s24  ;;  %p112_p0 = scmp.lt.u32.totalorder %s108_s24, %s167_s1 }
  0x25   :  { %p114_p1 = pnand %p112_p0, %p109_p13 }
  0x27   :  { %117 = shalt.err (!%p114_p1)
}
  0x28   :  { %62 = dma.vmem_to_hbm [thread:$0]  %s57_s20, 256, %s167_s1, [#allocation4], %s123_s16, %s123_s16, %s124_s17  }
  0x29   :  { %120 = dma.done.wait [#allocation4], 256  }
  0x2a   :  { %121 = vsyncadd [#allocation4], 4294967040 }
  0x2b   :  { %66 = vsyncpa [#allocation3], 1 }
  0x2c   :  { %67 = vsyncpa [#allocation4], 1 }

</bundles_post_ra>
